<compile_context>
chip_gen: v6e
topology: v6e:2x2x1
jax: 0.10.0
libtpu: 0.0.40
codegen_flags: <defaults>
</compile_context>

<pallas_src>
import jax
import jax.numpy as jnp
import numpy as np
from jax.experimental import pallas as pl
from jax.experimental.pallas import tpu as pltpu

_LANE = 128
_SUBLANE = 8


def _round_up(n, m):
    return ((n + m - 1) // m) * m


def _pad_axis(x, axis, target):
    pad = target - x.shape[axis]
    if pad <= 0:
        return x
    widths = [(0, 0)] * x.ndim
    widths[axis] = (0, pad)
    return jnp.pad(x, widths)


# ---------------------------------------------------------------------------
# Pallas kernel: fused CLIP-IQA head
# ---------------------------------------------------------------------------
def _clipiqa_head_kernel(x_ref, pw_ref, proj_ref, tdt_ref, out_ref):
    """Fused head for one batch tile.

    x_ref    : [TB, pd_pad]   per-image mean patch vectors (compute dtype)
    pw_ref   : [pd_pad, Dp]   patch-embedding weights (zero padded)
    proj_ref : [Dp, Dp]       image projection (zero padded)
    tdt_ref  : [Dp, Np]       (logit_scale * (t_pos_n - t_neg_n)).T (zero padded)
    out_ref  : [TB, Np]       per-pair probabilities, f32, lane dense
    """
    cdt = pw_ref.dtype

    # Patch embedding of the pre-pooled mean patch (MXU, f32 accumulation).
    x = jnp.dot(x_ref[...], pw_ref[...], preferred_element_type=jnp.float32)

    # Image projection: keep bf16 (compute dtype) operands going into the MXU,
    # accumulate in f32 (no f32 up-cast of the weight tile).
    img = jnp.dot(x.astype(cdt), proj_ref[...],
                  preferred_element_type=jnp.float32)

    # L2 normalize in f32. The small eps keeps zero-padded batch rows finite.
    img = img * jax.lax.rsqrt(
        jnp.sum(img * img, axis=-1, keepdims=True) + 1e-12)

    # softmax([lp, ln])[..., 0] == sigmoid(lp - ln); logit_scale and the
    # (pos - neg) fold are baked into tdt -> a single lane-dense matmul.
    logits = jnp.dot(img.astype(cdt), tdt_ref[...],
                     preferred_element_type=jnp.float32)
    out_ref[...] = 1.0 / (1.0 + jnp.exp(-logits))


# ---------------------------------------------------------------------------
# Wrapper-side preparation (patch mean-pool + parameter-only text branch)
# ---------------------------------------------------------------------------
def _prepare_inputs(image, params, patch, compute_dtype):
    B, C, H, W = image.shape
    ph = pw = patch
    pd = C * ph * pw
    hp = jax.lax.Precision.HIGHEST

    # ---- image branch glue: patch mean-pool (exact linearity hoist) --------
    # Linear patch encoder => mean over patches commutes with the matmul.
    # The reshape below is a free view of contiguous NCHW data, and the mean
    # is a fused XLA reduction: the image is read from HBM exactly once and
    # only [B, pd] is written (no transposed [B, P, pd] copy).
    xf = image.astype(jnp.float32)
    xf = xf.reshape(B, C, H // ph, ph, W // pw, pw)
    pooled = xf.mean(axis=(2, 4)).reshape(B, pd)                    # [B, pd]

    # ---- text branch: parameter-only, hoisted off the per-image hot path ---
    # synthetic text encoder: token-embedding gather + EOT pooling + projection
    tok_emb = params["tok_emb"].astype(jnp.float32)                 # [V, Dt]
    tokens = params["tokens"]                                       # [nc, 2, L]
    emb = tok_emb[tokens]                                           # [nc, 2, L, Dt]
    eot = jnp.argmax(tokens, axis=-1)                               # [nc, 2]
    t_pool = jnp.take_along_axis(emb, eot[..., None, None], axis=2)[:, :, 0]
    t = jnp.einsum("ncd,de->nce", t_pool,
                   params["txt_proj"].astype(jnp.float32),
                   precision=hp)                                    # [nc, 2, D]
    t = t * jax.lax.rsqrt(jnp.sum(t * t, axis=-1, keepdims=True))   # L2 norm
    scale = params["logit_scale_exp"].astype(jnp.float32)
    # prob(class 0) = softmax([lp, ln])[0] = sigmoid(scale * img_n.(tpos_n - tneg_n))
    t_diff = scale * (t[:, 0] - t[:, 1])                            # [nc, D]

    num_clip, D = t_diff.shape
    pd_pad = _round_up(pd, _LANE)
    d_pad = _round_up(D, _LANE)
    n_pad = _round_up(num_clip, _LANE)

    pooled = _pad_axis(pooled, 1, pd_pad)
    patch_w = _pad_axis(
        _pad_axis(params["patch_w"].astype(jnp.float32), 0, pd_pad), 1, d_pad)
    proj_w = _pad_axis(
        _pad_axis(params["proj_w"].astype(jnp.float32), 0, d_pad), 1, d_pad)
    tdt = _pad_axis(_pad_axis(t_diff, 1, d_pad), 0, n_pad).T        # [Dp, Np]

    return (pooled.astype(compute_dtype),
            patch_w.astype(compute_dtype),
            proj_w.astype(compute_dtype),
            tdt.astype(compute_dtype),
            num_clip)


def _clipiqa_pallas(pooled, patch_w, proj_w, tdt, num_clip, batch_tile=128):
    B, pd_pad = pooled.shape
    d_pad = patch_w.shape[1]
    n_pad = tdt.shape[1]

    tb = min(_round_up(B, _SUBLANE), _round_up(batch_tile, _SUBLANE))
    b_pad = _round_up(B, tb)
    pooled = _pad_axis(pooled, 0, b_pad)
    nb = b_pad // tb
    itemsize = jnp.dtype(pooled.dtype).itemsize

    # VMEM budget: double-buffered inputs + f32 output tile; cap at 48 MiB so
    # v7x (64 MiB/TC) keeps headroom for Mosaic internal scratch, floor at the
    # 32 MiB scoped default.
    est = (2 * (tb * pd_pad + pd_pad * d_pad + d_pad * d_pad + d_pad * n_pad)
           * itemsize + 2 * tb * n_pad * 4)
    vmem_limit = int(min(max(4 * est, 32 * 1024 * 1024), 48 * 1024 * 1024))

    grid_spec = pltpu.PrefetchScalarGridSpec(
        num_scalar_prefetch=0,
        grid=(nb,),
        in_specs=[
            pl.BlockSpec((tb, pd_pad), lambda i: (i, 0)),      # pooled patches
            # Constant-index weights: pl.Buffered(1) would halve their VMEM
            # footprint at realistic D; left at the default here for maximum
            # portability across jax versions.
            pl.BlockSpec((pd_pad, d_pad), lambda i: (0, 0)),   # patch_w
            pl.BlockSpec((d_pad, d_pad), lambda i: (0, 0)),    # proj_w
            pl.BlockSpec((d_pad, n_pad), lambda i: (0, 0)),    # t_diff.T
        ],
        out_specs=pl.BlockSpec((tb, n_pad), lambda i: (i, 0)),
    )

    # TODO(synk): for B < 2*tb only one TensorCore is used on v7x; a core-split
    # of the Dp contraction could recover it but is not worth it at these sizes.
    out = pl.pallas_call(
        _clipiqa_head_kernel,
        out_shape=jax.ShapeDtypeStruct((b_pad, n_pad), jnp.float32),
        grid_spec=grid_spec,
        compiler_params=pltpu.CompilerParams(
            dimension_semantics=("parallel",),
            vmem_limit_bytes=vmem_limit),
    )(pooled, patch_w, proj_w, tdt)

    return out[:B, :num_clip]          # slice off lane / batch padding


def clipiqa_forward(image, params, *, patch=4, batch_tile=128,
                    compute_dtype=jnp.bfloat16):
    """image: NCHW float32 [B, C, H, W]. Returns (pred_score, logits_list)."""
    pooled, patch_w, proj_w, tdt, num_clip = _prepare_inputs(
        image, params, patch, compute_dtype)
    pred = _clipiqa_pallas(pooled, patch_w, proj_w, tdt, num_clip, batch_tile)
    # Note: the original module's `logits_list` already holds the class-0
    # softmax probabilities (probs[:, 0] per prompt pair), so returning the
    # same tensor twice matches its (pred_score, logits_list) semantics.
    return pred, pred


# ---------------------------------------------------------------------------
# References
# ---------------------------------------------------------------------------
def _reference_prepared(pooled, patch_w, proj_w, tdt, num_clip):
    """Pure-JAX mirror of the kernel math on the prepared/cast/padded arrays."""
    cdt = patch_w.dtype
    x = jnp.dot(pooled, patch_w, preferred_element_type=jnp.float32)
    img = jnp.dot(x.astype(cdt), proj_w, preferred_element_type=jnp.float32)
    img = img * jax.lax.rsqrt(jnp.sum(img * img, axis=-1, keepdims=True) + 1e-12)
    logits = jnp.dot(img.astype(cdt), tdt, preferred_element_type=jnp.float32)
    return (1.0 / (1.0 + jnp.exp(-logits)))[:, :num_clip]


def _reference_semantic(image, params, *, patch=4):
    """f32 reference mirroring the ORIGINAL module semantics: per prompt pair,
    softmax over [pos, neg] logits and keep the class-0 probability."""
    hp = jax.lax.Precision.HIGHEST
    B, C, H, W = image.shape
    ph = pw = patch
    P = (H // ph) * (W // pw)
    pd = C * ph * pw
    patches = image.reshape(B, C, H // ph, ph, W // pw, pw)
    patches = patches.transpose(0, 2, 4, 1, 3, 5).reshape(B, P, pd)

    x = jnp.einsum("bpk,kd->bpd", patches, params["patch_w"], precision=hp)
    img_feat = jnp.matmul(x.mean(axis=1), params["proj_w"], precision=hp)

    tok_emb = params["tok_emb"]
    tokens = params["tokens"]
    emb = tok_emb[tokens]
    eot = tokens.argmax(axis=-1)
    pooled = jnp.take_along_axis(emb, eot[..., None, None], axis=2)[:, :, 0]
    t = jnp.einsum("ncd,de->nce", pooled, params["txt_proj"], precision=hp)

    def l2n(v):
        return v / jnp.linalg.norm(v, axis=-1, keepdims=True)

    img_feat, t = l2n(img_feat), l2n(t)
    s = params["logit_scale_exp"]
    lp = s * jnp.matmul(img_feat, t[:, 0].T, precision=hp)   # [B, nc]
    ln_ = s * jnp.matmul(img_feat, t[:, 1].T, precision=hp)  # [B, nc]
    probs = jax.nn.softmax(jnp.stack([lp, ln_], axis=-1), axis=-1)
    return probs[..., 0]


if __name__ == "__main__":
    # small synthetic shapes consistent with the module's forward
    B, C, H, W = 2, 3, 16, 16      # image batch, NCHW
    patch = 4
    D = 32                         # joint embedding dim
    Dt = 32                        # text width
    num_clip = 3                   # number of (pos, neg) prompt pairs
    L = 8                          # context length
    V = 64                         # vocab size
    pd = C * patch * patch

    key = jax.random.PRNGKey(0)
    ks = jax.random.split(key, 6)

    image = jax.random.normal(ks[0], (B, C, H, W), jnp.float32)
    params = {
        "patch_w": 0.05 * jax.random.normal(ks[1], (pd, D), jnp.float32),
        "proj_w": 0.05 * jax.random.normal(ks[2], (D, D), jnp.float32),
        "tok_emb": 0.05 * jax.random.normal(ks[3], (V, Dt), jnp.float32),
        "txt_proj": 0.05 * jax.random.normal(ks[4], (Dt, D), jnp.float32),
        "tokens": jax.random.randint(ks[5], (num_clip, 2, L), 0, V,
                                     dtype=jnp.int32),
        "logit_scale_exp": jnp.float32(np.exp(np.log(1.0 / 0.07))),  # CLIP init
    }

    # --- perf path: bf16 MXU operands, f32 accumulate/normalize/sigmoid -----
    pred_score, logits_list = clipiqa_forward(
        image, params, patch=patch, compute_dtype=jnp.bfloat16)
    pred_score = jax.block_until_ready(pred_score)

    prepared = _prepare_inputs(image, params, patch, jnp.bfloat16)
    ref_mirror = _reference_prepared(*prepared)
    np.testing.assert_allclose(np.asarray(pred_score), np.asarray(ref_mirror),
                               rtol=5e-3, atol=5e-4)

    # --- f32 path vs original-module-semantics reference (softmax, class 0) -
    pred_f32, _ = clipiqa_forward(
        image, params, patch=patch, compute_dtype=jnp.float32)
    pred_f32 = jax.block_until_ready(pred_f32)
    ref_sem = _reference_semantic(image, params, patch=patch)
    np.testing.assert_allclose(np.asarray(pred_f32), np.asarray(ref_sem),
                               rtol=1e-3, atol=2e-4)

    assert pred_score.shape == (B, num_clip)
    assert pred_score.dtype == jnp.float32
    assert logits_list.shape == (B, num_clip)

    print("KERNEL_OK")
</pallas_src>

<mosaic_0001>
module attributes {stable_mosaic.version = 11 : i64} {
  func.func @_clipiqa_head_kernel(%arg0: i32, %arg1: memref<8x128xbf16, #tpu.memory_space<vmem>>, %arg2: memref<128x128xbf16, #tpu.memory_space<vmem>>, %arg3: memref<128x128xbf16, #tpu.memory_space<vmem>>, %arg4: memref<128x128xbf16, #tpu.memory_space<vmem>>, %arg5: memref<8x128xf32, #tpu.memory_space<vmem>>) attributes {dimension_semantics = [#tpu.dimension_semantics<parallel>], iteration_bounds = array<i64: 1>, scalar_prefetch = 0 : i64, scratch_operands = 0 : i64, tpu.core_type = #tpu.core_type<tc>, window_params = [{transform_indices = @transform_0, window_bounds = array<i64: 8, 128>}, {pipeline_mode = #tpu.pipeline_mode<synchronous>, transform_indices = @transform_1, window_bounds = array<i64: 128, 128>}, {pipeline_mode = #tpu.pipeline_mode<synchronous>, transform_indices = @transform_2, window_bounds = array<i64: 128, 128>}, {pipeline_mode = #tpu.pipeline_mode<synchronous>, transform_indices = @transform_3, window_bounds = array<i64: 128, 128>}, {transform_indices = @transform_4, window_bounds = array<i64: 8, 128>}]} {
    %c0 = arith.constant 0 : index
    %c0_0 = arith.constant 0 : index
    %0 = vector.load %arg1[%c0, %c0_0] : memref<8x128xbf16, #tpu.memory_space<vmem>>, vector<8x128xbf16>
    %c0_1 = arith.constant 0 : index
    %c0_2 = arith.constant 0 : index
    %1 = vector.load %arg2[%c0_1, %c0_2] : memref<128x128xbf16, #tpu.memory_space<vmem>>, vector<128x128xbf16>
    %cst = arith.constant dense<0.000000e+00> : vector<8x128xf32>
    %2 = tpu.matmul %0, %1, %cst {dimension_numbers = #tpu.dot_dimension_numbers<[1], [0], [0], [1], [0, 0, 1, 1], [], []>} : vector<8x128xbf16>, vector<128x128xbf16>, vector<8x128xf32> -> vector<8x128xf32>
    %3 = arith.truncf %2 : vector<8x128xf32> to vector<8x128xbf16>
    %c0_3 = arith.constant 0 : index
    %c0_4 = arith.constant 0 : index
    %4 = vector.load %arg3[%c0_3, %c0_4] : memref<128x128xbf16, #tpu.memory_space<vmem>>, vector<128x128xbf16>
    %cst_5 = arith.constant dense<0.000000e+00> : vector<8x128xf32>
    %5 = tpu.matmul %3, %4, %cst_5 {dimension_numbers = #tpu.dot_dimension_numbers<[1], [0], [0], [1], [0, 0, 1, 1], [], []>} : vector<8x128xbf16>, vector<128x128xbf16>, vector<8x128xf32> -> vector<8x128xf32>
    %6 = arith.mulf %5, %5 : vector<8x128xf32>
    %cst_6 = arith.constant dense<0.000000e+00> : vector<8xf32>
    %7 = vector.multi_reduction <add>, %6, %cst_6 [1] : vector<8x128xf32> to vector<8xf32>
    %8 = vector.shape_cast %7 : vector<8xf32> to vector<8x1xf32>
    %cst_7 = arith.constant 9.99999996E-13 : f32
    %9 = vector.broadcast %cst_7 : f32 to vector<8x1xf32>
    %10 = arith.addf %8, %9 : vector<8x1xf32>
    %11 = math.rsqrt %10 : vector<8x1xf32>
    %12 = vector.broadcast %11 : vector<8x1xf32> to vector<8x128xf32>
    %13 = arith.mulf %5, %12 : vector<8x128xf32>
    %14 = arith.truncf %13 : vector<8x128xf32> to vector<8x128xbf16>
    %c0_8 = arith.constant 0 : index
    %c0_9 = arith.constant 0 : index
    %15 = vector.load %arg4[%c0_8, %c0_9] : memref<128x128xbf16, #tpu.memory_space<vmem>>, vector<128x128xbf16>
    %cst_10 = arith.constant dense<0.000000e+00> : vector<8x128xf32>
    %16 = tpu.matmul %14, %15, %cst_10 {dimension_numbers = #tpu.dot_dimension_numbers<[1], [0], [0], [1], [0, 0, 1, 1], [], []>} : vector<8x128xbf16>, vector<128x128xbf16>, vector<8x128xf32> -> vector<8x128xf32>
    %cst_11 = arith.constant 0.000000e+00 : f32
    %17 = vector.broadcast %cst_11 : f32 to vector<8x128xf32>
    %18 = arith.subf %17, %16 : vector<8x128xf32>
    %19 = math.exp %18 : vector<8x128xf32>
    %cst_12 = arith.constant 1.000000e+00 : f32
    %20 = vector.broadcast %cst_12 : f32 to vector<8x128xf32>
    %21 = arith.addf %20, %19 : vector<8x128xf32>
    %cst_13 = arith.constant 1.000000e+00 : f32
    %22 = vector.broadcast %cst_13 : f32 to vector<8x128xf32>
    %23 = arith.divf %22, %21 : vector<8x128xf32>
    %c0_14 = arith.constant 0 : index
    %c0_15 = arith.constant 0 : index
    %24 = vector.load %arg5[%c0_14, %c0_15] : memref<8x128xf32, #tpu.memory_space<vmem>>, vector<8x128xf32>
    tpu.vector_store %arg5[%c0_14, %c0_15], %23 {strides = array<i32>} : memref<8x128xf32, #tpu.memory_space<vmem>>, vector<8x128xf32>,
    return
  }
  func.func @transform_0(%arg0: i32) -> (i32, i32) {
    %c0_i32 = arith.constant 0 : i32
    %c0_i32_0 = arith.constant 0 : i32
    return %arg0, %c0_i32 : i32, i32
  }
  func.func @transform_1(%arg0: i32) -> (i32, i32) {
    %c0_i32 = arith.constant 0 : i32
    %c0_i32_0 = arith.constant 0 : i32
    %c0_i32_1 = arith.constant 0 : i32
    return %c0_i32, %c0_i32_0 : i32, i32
  }
  func.func @transform_2(%arg0: i32) -> (i32, i32) {
    %c0_i32 = arith.constant 0 : i32
    %c0_i32_0 = arith.constant 0 : i32
    %c0_i32_1 = arith.constant 0 : i32
    return %c0_i32, %c0_i32_0 : i32, i32
  }
  func.func @transform_3(%arg0: i32) -> (i32, i32) {
    %c0_i32 = arith.constant 0 : i32
    %c0_i32_0 = arith.constant 0 : i32
    %c0_i32_1 = arith.constant 0 : i32
    return %c0_i32, %c0_i32_0 : i32, i32
  }
  func.func @transform_4(%arg0: i32) -> (i32, i32) {
    %c0_i32 = arith.constant 0 : i32
    %c0_i32_0 = arith.constant 0 : i32
    return %arg0, %c0_i32 : i32, i32
  }
}

</mosaic_0001>

<bundles_post_ra>
// kernel: tpu_custom_call.1
= control target key start
LH: loop header
LB: loop body
LE: loop exit
PB: predicated region body
PF: predicated region fallthrough
CT: control target
= control target key end

     0   :  { %9 = vsyncpa [#allocation3], 0  ;;  %s763_s0 = inlined_call_operand.hbm [shape: bf16[8,128], index: 0, kind: input, shape index: {}]   ;;  %s764_s1 = inlined_call_operand.hbm [shape: bf16[128,128], index: 1, kind: input, shape index: {}]   ;;  %s765_s2 = inlined_call_operand.hbm [shape: bf16[128,128], index: 2, kind: input, shape index: {}]   ;;  %s766_s3 = inlined_call_operand.hbm [shape: bf16[128,128], index: 3, kind: input, shape index: {}]   ;;  %s767_s4 = inlined_call_operand.hbm [shape: f32[8,128], index: 4, kind: output, shape index: {}]  }
   0x1   :  { %10 = vsyncpa [#allocation6], 0 }
   0x2   :  { %11 = vsyncpa [#allocation9], 0 }
   0x3   :  { %12 = vsyncpa [#allocation4], 0  ;;  %s675_s15 = smov [#allocation5]  }
   0x4   :  { %s28_s16 = sshll.u32 %s675_s15, 4  ;;  %s29_s16 = int_to_ptr.vmem [resolvable:$true] %s28_s16 }
   0x5   :  { %s575_s17 = scalar_lea.vmem %s29_s16, 1024  ;;  %p580_p1 = scmp.lt.s32.totalorder %s29_s16, %s29_s16 }
   0x6   :  { %p576_p0 = scmp.ne.s32.totalorder %s29_s16, %s575_s17  ;;  %p581_p2 = scmp.lt.s32.totalorder %s575_s17, %s575_s17 }
   0x8   :  { %p582_p3 = por %p581_p2, %p580_p1 }
   0xa   :  { %p583_p4 = pnand %p582_p3, %p576_p0 }
   0xc   :  { %586 = shalt.err (!%p583_p4)
}
   0xd   :  { %s676_s18 = smov 64   ;;  %s677_s19 = smov 4  }
   0xe   :  { %34 = dma.hbm_to_vmem [thread:$0]  %s764_s1, 1024, %s29_s16, [#allocation6], %s676_s18, %s676_s18, %s677_s19  }
   0xf   :  { %s678_s22 = smov [#allocation2]   ;;  %s679_s24 = smov [#allocation7]  }
  0x10   :  { %s19_s23 = sshll.u32 %s678_s22, 4  ;;  %s40_s25 = sshll.u32 %s679_s24, 4  ;;  %s20_s23 = int_to_ptr.vmem [resolvable:$true] %s19_s23  ;;  %s41_s25 = int_to_ptr.vmem [resolvable:$true] %s40_s25 }
  0x11   :  { %s595_s26 = scalar_lea.vmem %s20_s23, 64  ;;  %p600_p6 = scmp.lt.s32.totalorder %s20_s23, %s20_s23 }
  0x12   :  { %p596_p5 = scmp.ne.s32.totalorder %s20_s23, %s595_s26  ;;  %p601_p7 = scmp.lt.s32.totalorder %s595_s26, %s595_s26 }
  0x14   :  { %p602_p8 = por %p601_p7, %p600_p6 }
  0x16   :  { %p603_p9 = pnand %p602_p8, %p596_p5 }
  0x18   :  { %606 = shalt.err (!%p603_p9)
}
  0x19   :  { %22 = dma.hbm_to_vmem [thread:$0]  %s763_s0, 64, %s20_s23, [#allocation3]  }
  0x1a   :  { %s615_s29 = scalar_lea.vmem %s41_s25, 1024  ;;  %p620_p11 = scmp.lt.s32.totalorder %s41_s25, %s41_s25 }
  0x1b   :  { %p616_p10 = scmp.ne.s32.totalorder %s41_s25, %s615_s29  ;;  %p621_p12 = scmp.lt.s32.totalorder %s615_s29, %s615_s29 }
  0x1d   :  { %p622_p13 = por %p621_p12, %p620_p11 }
  0x1f   :  { %p623_p0 = pnand %p622_p13, %p616_p10 }
  0x21   :  { %626 = shalt.err (!%p623_p0)
}
  0x22   :  { %46 = dma.hbm_to_vmem [thread:$0]  %s765_s2, 1024, %s41_s25, [#allocation6], %s676_s18, %s676_s18, %s677_s19  }
  0x23   :  { %s680_s5 = smov [#allocation8]  }
  0x24   :  { %s52_s6 = sshll.u32 %s680_s5, 4  ;;  %s53_s6 = int_to_ptr.vmem [resolvable:$true] %s52_s6 }
  0x25   :  { %s635_s7 = scalar_lea.vmem %s53_s6, 1024  ;;  %p640_p2 = scmp.lt.s32.totalorder %s53_s6, %s53_s6 }
  0x26   :  { %p636_p1 = scmp.ne.s32.totalorder %s53_s6, %s635_s7  ;;  %p641_p3 = scmp.lt.s32.totalorder %s635_s7, %s635_s7 }
  0x28   :  { %p642_p4 = por %p641_p3, %p640_p2 }
  0x2a   :  { %p643_p5 = pnand %p642_p4, %p636_p1 }
  0x2c   :  { %646 = shalt.err (!%p643_p5)
}
  0x2d   :  { %58 = dma.hbm_to_vmem [thread:$0]  %s766_s3, 1024, %s53_s6, [#allocation9], %s676_s18, %s676_s18, %s677_s19  }
  0x2e   :  { %667 = dma.done.wait [#allocation3], 64  }
  0x2f   :  { %668 = vsyncadd [#allocation3], 4294967232 }
  0x30   :  { %669 = dma.done.wait [#allocation6], 2048  }
  0x31   :  { %670 = vsyncadd [#allocation6], 4294965248 }
  0x32   :  { %671 = dma.done.wait [#allocation9], 1024  }
  0x33   :  { %672 = vsyncadd [#allocation9], 4294966272  ;;  %v681_v0 = vmov 0.0   ;;  %vm682_vm0 = vmmov 0   ;;  %v537_v1 = vld [vmem:[#allocation5 + $0x38] sm:$0xff]   ;;  %v538_v2 = vld [vmem:[#allocation5 + $0x30] sm:$0xff]  }
  0x34   :  { %468 = vmatprep.subr.bf16.mxu0 %v681_v0  ;;  %484 = vmatprep.mubr.msk.bf16.mxu0 %vm682_vm0, %v681_v0  ;;  %v539_v3 = vld [vmem:[#allocation5 + $0x28] sm:$0xff]   ;;  %v545_v4 = vld [vmem:[#allocation7 + $0x38] sm:$0xff]   ;;  %v540_v5 = vld [vmem:[#allocation5 + $0x20] sm:$0xff]   ;;  %s683_s2 = smov [#allocation10]  }
  0x35   :  { %488 = vmatprep.subr.bf16.mxu1 %v681_v0  ;;  %504 = vmatprep.mubr.msk.bf16.mxu1 %vm682_vm0, %v681_v0  ;;  %v546_v6 = vld [vmem:[#allocation7 + $0x30] sm:$0xff]   ;;  %v541_v7 = vld [vmem:[#allocation5 + $0x18] sm:$0xff]   ;;  %v547_v8 = vld [vmem:[#allocation7 + $0x28] sm:$0xff]   ;;  %s406_s3 = sshll.u32 %s683_s2, 4  ;;  %s407_s3 = int_to_ptr.vmem [resolvable:$true] %s406_s3 }
  0x36   :  { %469 = vmatpush3.bf16.msra.mxu0 %v537_v1  ;;  %489 = vmatpush3.bf16.msra.mxu1 %v545_v4  ;;  %v542_v9 = vld [vmem:[#allocation5 + $0x10] sm:$0xff]   ;;  %v548_v10 = vld [vmem:[#allocation7 + $0x20] sm:$0xff]   ;;  %v543_v11 = vld [vmem:[#allocation5 + $0x8] sm:$0xff]   ;;  %s647_s9 = scalar_lea.vmem %s407_s3, 128  ;;  %p652_p7 = scmp.lt.s32.totalorder %s407_s3, %s407_s3 }
  0x37   :  { %470 = vmatprep.subr.bf16.mxu0 %v681_v0  ;;  %490 = vmatprep.subr.bf16.mxu1 %v681_v0  ;;  %v549_v12 = vld [vmem:[#allocation7 + $0x18] sm:$0xff]   ;;  %v544_v13 = vld [vmem:[#allocation5] sm:$0xff]   ;;  %v550_v14 = vld [vmem:[#allocation7 + $0x10] sm:$0xff]   ;;  %p648_p6 = scmp.ne.s32.totalorder %s407_s3, %s647_s9  ;;  %p653_p8 = scmp.lt.s32.totalorder %s647_s9, %s647_s9 }
  0x38   :  { %v72_v15 = vld [vmem:[#allocation2] sm:$0xf]  ;;  %v551_v16 = vld [vmem:[#allocation7 + $0x8] sm:$0xff]   ;;  %v552_v17 = vld [vmem:[#allocation7] sm:$0xff]  }
  0x39   :  { %v553_v23 = vld [vmem:[#allocation8 + $0x38] sm:$0xff]   ;;  %v554_v24 = vld [vmem:[#allocation8 + $0x30] sm:$0xff]   ;;  %v555_v25 = vld [vmem:[#allocation8 + $0x28] sm:$0xff]   ;;  %p654_p9 = por %p653_p8, %p652_p7 }
  0x3a   :  { %471 = vmatpush3.bf16.msra.mxu0 %v538_v2  ;;  %491 = vmatpush3.bf16.msra.mxu1 %v546_v6  ;;  %v556_v31 = vld [vmem:[#allocation8 + $0x20] sm:$0xff]   ;;  %v557_v32 = vld [vmem:[#allocation8 + $0x18] sm:$0xff]   ;;  %v558_v33 = vld [vmem:[#allocation8 + $0x10] sm:$0xff]  }
  0x3b   :  { %472 = vmatprep.subr.bf16.mxu0 %v681_v0  ;;  %492 = vmatprep.subr.bf16.mxu1 %v681_v0  ;;  %v559_v34 = vld [vmem:[#allocation8 + $0x8] sm:$0xff]   ;;  %v560_v35 = vld [vmem:[#allocation8] sm:$0xff]   ;;  %p655_p10 = pnand %p654_p9, %p648_p6 }
  0x3e   :  { %473 = vmatpush3.bf16.msra.mxu0 %v539_v3  ;;  %493 = vmatpush3.bf16.msra.mxu1 %v547_v8 }
  0x3f   :  { %474 = vmatprep.subr.bf16.mxu0 %v681_v0  ;;  %494 = vmatprep.subr.bf16.mxu1 %v681_v0 }
  0x42   :  { %475 = vmatpush3.bf16.msra.mxu0 %v540_v5  ;;  %495 = vmatpush3.bf16.msra.mxu1 %v548_v10 }
  0x43   :  { %476 = vmatprep.subr.bf16.mxu0 %v681_v0  ;;  %496 = vmatprep.subr.bf16.mxu1 %v681_v0 }
  0x46   :  { %477 = vmatpush3.bf16.msra.mxu0 %v541_v7  ;;  %497 = vmatpush3.bf16.msra.mxu1 %v549_v12 }
  0x47   :  { %478 = vmatprep.subr.bf16.mxu0 %v681_v0  ;;  %498 = vmatprep.subr.bf16.mxu1 %v681_v0 }
  0x4a   :  { %479 = vmatpush3.bf16.msra.mxu0 %v542_v9  ;;  %499 = vmatpush3.bf16.msra.mxu1 %v550_v14 }
  0x4b   :  { %480 = vmatprep.subr.bf16.mxu0 %v681_v0  ;;  %500 = vmatprep.subr.bf16.mxu1 %v681_v0 }
  0x4e   :  { %481 = vmatpush3.bf16.msra.mxu0 %v543_v11  ;;  %501 = vmatpush3.bf16.msra.mxu1 %v551_v16 }
  0x4f   :  { %482 = vmatprep.subr.bf16.mxu0 %v681_v0  ;;  %502 = vmatprep.subr.bf16.mxu1 %v681_v0 }
  0x52   :  { %483 = vmatpush3.bf16.msra.mxu0 %v544_v13  ;;  %503 = vmatpush3.bf16.msra.mxu1 %v552_v17 }
  0x53   :  { %508 = vmatprep.subr.bf16.mxu0 %v681_v0 }
  0x55   :  { %485 = vmatmul.mubr.bf16.vlgmr.msra.gmra.mxu0 %v72_v15 }
  0x56   :  { %524 = vmatprep.mubr.msk.bf16.mxu0 %vm682_vm0, %v681_v0  ;;  %509 = vmatpush3.bf16.msra.mxu0 %v553_v23 }
  0x57   :  { %510 = vmatprep.subr.bf16.mxu0 %v681_v0 }
  0x5a   :  { %511 = vmatpush3.bf16.msra.mxu0 %v554_v24 }
  0x5b   :  { %512 = vmatprep.subr.bf16.mxu0 %v681_v0 }
  0x5e   :  { %513 = vmatpush3.bf16.msra.mxu0 %v555_v25 }
  0x5f   :  { %514 = vmatprep.subr.bf16.mxu0 %v681_v0 }
  0x62   :  { %515 = vmatpush3.bf16.msra.mxu0 %v556_v31 }
  0x63   :  { %516 = vmatprep.subr.bf16.mxu0 %v681_v0 }
  0x66   :  { %517 = vmatpush3.bf16.msra.mxu0 %v557_v32 }
  0x67   :  { %518 = vmatprep.subr.bf16.mxu0 %v681_v0 }
  0x6a   :  { %519 = vmatpush3.bf16.msra.mxu0 %v558_v33 }
  0x6b   :  { %520 = vmatprep.subr.bf16.mxu0 %v681_v0 }
  0x6e   :  { %521 = vmatpush3.bf16.msra.mxu0 %v559_v34 }
  0x6f   :  { %522 = vmatprep.subr.bf16.mxu0 %v681_v0 }
  0x72   :  { %523 = vmatpush3.bf16.msra.mxu0 %v560_v35 }
 0x115   :  { %v171_v18 = vpop.f32.mrf.mxu0 }
 0x116   :  { %v177_v19 = vpack.c.bf16 %v171_v18, %v171_v18 }
 0x117   :  { %v486_v20 = vpop.f32.mrf.mxu0 }
 0x118   :  { %505 = vmatmul.mubr.bf16.vlgmr.msra.gmra.mxu1 %v177_v19 }
 0x119   :  { %v174_v21 = vpop.f32.mrf.mxu0 }
 0x11b   :  { %v487_v22 = vpop.f32.mrf.mxu0 }
 0x1d8   :  { %v276_v26 = vpop.f32.mrf.mxu1 }
 0x1d9   :  { %v282_v27 = vmul.f32 %v276_v26, %v276_v26 }
 0x1da   :  { %v506_v28 = vpop.f32.mrf.mxu1 }
 0x1db   :  { %283 = vadd.xlane.f32.xlu0 %v282_v27 }
 0x1dc   :  { %v279_v29 = vpop.f32.mrf.mxu1 }
 0x1de   :  { %v507_v30 = vpop.f32.mrf.mxu1 }
 0x264   :  { %v284_v36 = vpop.xlane.xlu0 %283 }
 0x265   :  { %v285_v37 = vadd.f32 1e-12, %v284_v36 }
 0x267   :  { %561 = vrsqrt.f32 %v285_v37 }
 0x274   :  { %v562_v38 = vpop.eup %561 }
 0x275   :  { %v287_v39 = vmul.f32 %v562_v38, %v276_v26 }
 0x277   :  { %v288_v40 = vpack.c.bf16 %v287_v39, %v287_v39 }
 0x279   :  { %525 = vmatmul.mubr.bf16.vlgmr.msra.gmra.mxu0 %v288_v40 }
 0x339   :  { %v387_v41 = vpop.f32.mrf.mxu0 }
 0x33a   :  { %v393_v42 = vsub.f32 0.0, %v387_v41 }
 0x33b   :  { %v526_v43 = vpop.f32.mrf.mxu0 }
 0x33c   :  { %v394_v44 = vmul.f32 1.442695, %v393_v42 }
 0x33d   :  { %v390_v45 = vpop.f32.mrf.mxu0 }
 0x33e   :  { %563 = vpow2.f32 %v394_v44 }
 0x33f   :  { %v527_v46 = vpop.f32.mrf.mxu0 }
 0x34b   :  { %v564_v47 = vpop.eup %563 }
 0x34c   :  { %v396_v48 = vadd.f32 1.0, %v564_v47 }
 0x34e   :  { %565 = vrcp.f32 %v396_v48 }
 0x35b   :  { %v566_v49 = vpop.eup %565 }
 0x35c   :  { %399 = vst [vmem:[#allocation10] sm:$0xff] %v566_v49 }
 0x35d   :  { %658 = shalt.err (!%p655_p10)
}
 0x35e   :  { %409 = dma.vmem_to_hbm [thread:$0]  %s407_s3, 128, %s767_s4, [#allocation4]  }
 0x35f   :  { %673 = dma.done.wait [#allocation4], 128  }
 0x360   :  { %674 = vsyncadd [#allocation4], 4294967168 }
 0x361   :  { %413 = vsyncpa [#allocation3], 1 }
 0x362   :  { %414 = vsyncpa [#allocation6], 1 }
 0x363   :  { %415 = vsyncpa [#allocation9], 1 }
 0x364   :  { %416 = vsyncpa [#allocation4], 1 }

</bundles_post_ra>
